<compile_context>
chip_gen: v5e
topology: v5e:2x2
jax: 0.10.0
libtpu: 0.0.40
codegen_flags: <defaults>
</compile_context>

<pallas_src>
import functools

import jax
import jax.numpy as jnp
from jax import lax
from jax.experimental import pallas as pl
from jax.experimental.pallas import tpu as pltpu


def _interval_lu_kernel(xl_ref, xu_ref, wl_ref, wu_ref, b_ref, out_ref,
                        acc_lo_ref, acc_hi_ref, *, fused_out):
    """One (i, j, k) grid step.

    xl_ref, xu_ref : (TM, TK)   lower / upper input slices
    wl_ref, wu_ref : (TN, TK)   weight tiles
    b_ref          : (1, TN)    bias tile
    out_ref        : (TM, 2*N)  if fused_out (single N tile)
                     (2, TM, TN) otherwise ([0]=lower, [1]=upper)
    acc_lo/hi_ref  : (TM, TN)   f32 accumulators (VMEM scratch)
    """
    k = pl.program_id(2)

    @pl.when(k == 0)
    def _init():
        acc_lo_ref[...] = jnp.zeros_like(acc_lo_ref)
        acc_hi_ref[...] = jnp.zeros_like(acc_hi_ref)

    xl = xl_ref[...]
    xu = xu_ref[...]
    wl = wl_ref[...]
    wu = wu_ref[...]

    # Two maximums only; negative halves by subtraction (less VPU work).
    wl_pos = jnp.maximum(wl, 0.0)
    wl_neg = wl - wl_pos
    wu_pos = jnp.maximum(wu, 0.0)
    wu_neg = wu - wu_pos

    # x @ W.T == contract dim 1 with dim 1 (no explicit transpose on the MXU
    # path).  Four independent accumulates, each straight into its half -- no
    # concatenated RHS copies, no (TM, 2*TN) temporary.
    dn = (((1,), (1,)), ((), ()))
    acc_lo_ref[...] += lax.dot_general(xl, wl_pos, dn,
                                       preferred_element_type=jnp.float32)
    acc_lo_ref[...] += lax.dot_general(xu, wu_neg, dn,
                                       preferred_element_type=jnp.float32)
    acc_hi_ref[...] += lax.dot_general(xu, wu_pos, dn,
                                       preferred_element_type=jnp.float32)
    acc_hi_ref[...] += lax.dot_general(xl, wl_neg, dn,
                                       preferred_element_type=jnp.float32)

    @pl.when(k == pl.num_programs(2) - 1)
    def _finalize():
        b = b_ref[...]                                   # (1, TN) broadcasts
        lo = (acc_lo_ref[...] + b).astype(out_ref.dtype)
        hi = (acc_hi_ref[...] + b).astype(out_ref.dtype)
        if fused_out:
            tn = acc_lo_ref.shape[1]
            out_ref[:, :tn] = lo
            out_ref[:, tn:] = hi
        else:
            out_ref[0] = lo
            out_ref[1] = hi


def _pick_tile(dim, preferred, align):
    """Largest multiple of `align` <= preferred that divides dim; else full dim."""
    if dim >= align and dim % align == 0:
        t = (min(preferred, dim) // align) * align
        while dim % t:
            t -= align
        return t
    return dim   # full-dim block (valid: block dim equals the array dim)


def linear_interval_lu(x, lower_weight, upper_weight, bias, *,
                       tm=None, tn=None, tk=None):
    """x: (B, 2*in_features) -> (B, 2*out_features)."""
    B, two_in = x.shape
    in_features = two_in // 2
    assert two_in == 2 * in_features
    out_features, w_in = lower_weight.shape
    assert w_in == in_features
    assert upper_weight.shape == (out_features, in_features)
    if bias is None:
        bias = jnp.zeros((out_features,), x.dtype)

    itemsize = jnp.dtype(x.dtype).itemsize
    m_align = max(8, 32 // itemsize)          # 8 f32 / 16 bf16 / 32 int8

    if tm is None:
        tm = _pick_tile(B, 512, m_align)
    if tn is None:
        tn = _pick_tile(out_features, 256, 128)
    if tk is None:
        tk = _pick_tile(in_features, 1024, 128)

    # Validate user-supplied tiles against the (8,128)/full-dim BlockSpec rule.
    assert B % tm == 0 and out_features % tn == 0 and in_features % tk == 0, \
        "tile sizes must divide (B, out_features, in_features)"
    assert tk % 128 == 0 or tk == in_features, \
        "tk must be a multiple of 128 or equal to in_features"
    assert tn % 128 == 0 or tn == out_features, \
        "tn must be a multiple of 128 or equal to out_features"
    assert tm % m_align == 0 or tm == B, \
        f"tm must be a multiple of {m_align} or equal to B"

    # v7x megacore: make sure the ("parallel","parallel") axes have >= 2 steps
    # when they can be split cleanly (no-op on v5e/v6e single-core).
    if B // tm == 1 and out_features // tn == 1:
        if tn >= 256 and tn % 256 == 0:
            tn //= 2
        elif tm >= 2 * m_align and tm % (2 * m_align) == 0:
            tm //= 2

    nm, nn, nk = B // tm, out_features // tn, in_features // tk
    bias2d = bias.reshape(1, out_features)

    if tk % 128 == 0:
        # Lower/upper halves selected purely via BlockSpec index maps over the
        # SAME array -> no wrapper-side slicing, no extra HBM pass over x.
        x_lo, x_hi = x, x
        xl_spec = pl.BlockSpec((tm, tk), lambda i, j, k: (i, k))
        xu_spec = pl.BlockSpec((tm, tk), lambda i, j, k: (i, k + nk))
    else:
        # Small / oddly-shaped in_features: explicit halves so the block last
        # dim equals the full array dim (TPU (8,128) tiling rule).
        x_lo = x[:, :in_features]
        x_hi = x[:, in_features:]
        xl_spec = pl.BlockSpec((tm, tk), lambda i, j, k: (i, k))
        xu_spec = pl.BlockSpec((tm, tk), lambda i, j, k: (i, k))

    # Output layout: lane-dense, no sublane padding, full-width stores.
    fused_out = (nn == 1)
    if fused_out:
        # Single N tile: write the final (B, 2*out) layout directly.
        out_shape = jax.ShapeDtypeStruct((B, 2 * out_features), x.dtype)
        out_spec = pl.BlockSpec((tm, 2 * out_features), lambda i, j, k: (i, 0))
        out_block_elems = tm * 2 * out_features
    else:
        # (2, B, out) with a (2, tm, tn) block: dense, unmasked stores; the
        # wrapper does one transpose+reshape to recover concat([lo, up], 1).
        out_shape = jax.ShapeDtypeStruct((2, B, out_features), x.dtype)
        out_spec = pl.BlockSpec((2, tm, tn), lambda i, j, k: (0, i, j))
        out_block_elems = 2 * tm * tn

    # VMEM budget from the actual tile footprint (double-buffered windows +
    # f32 accumulators), capped at ~3/4 of physical VMEM (v7x-safe).
    window_bytes = itemsize * (2 * tm * tk + 2 * tn * tk + tn + out_block_elems)
    need_bytes = 2 * window_bytes + 2 * tm * tn * 4
    try:
        phys = int(pltpu.get_tpu_info().vmem_capacity_bytes)
    except Exception:
        phys = 64 * 1024 * 1024
    vmem_limit = int(min(max(32 * 1024 * 1024, 2 * need_bytes),
                         (phys * 3) // 4, 112 * 1024 * 1024))

    cost = pl.CostEstimate(
        flops=8 * B * in_features * out_features,
        transcendentals=0,
        bytes_accessed=(x.size + lower_weight.size + upper_weight.size
                        + bias.size + B * 2 * out_features) * itemsize,
    )

    out = pl.pallas_call(
        functools.partial(_interval_lu_kernel, fused_out=fused_out),
        out_shape=out_shape,
        grid_spec=pltpu.PrefetchScalarGridSpec(
            num_scalar_prefetch=0,
            grid=(nm, nn, nk),
            in_specs=[
                xl_spec,
                xu_spec,
                pl.BlockSpec((tn, tk), lambda i, j, k: (j, k)),
                pl.BlockSpec((tn, tk), lambda i, j, k: (j, k)),
                pl.BlockSpec((1, tn), lambda i, j, k: (0, j)),
            ],
            out_specs=out_spec,
            scratch_shapes=[pltpu.VMEM((tm, tn), jnp.float32),
                            pltpu.VMEM((tm, tn), jnp.float32)],
        ),
        compiler_params=pltpu.CompilerParams(
            dimension_semantics=("parallel", "parallel", "arbitrary"),
            vmem_limit_bytes=vmem_limit,
        ),
        cost_estimate=cost,
    )(x_lo, x_hi, lower_weight, upper_weight, bias2d)

    if fused_out:
        return out
    # (2, B, out) -> (B, 2, out) -> (B, 2*out) == torch.cat([lower, upper], 1).
    return jnp.transpose(out, (1, 0, 2)).reshape(B, 2 * out_features)


def _reference(x, wl, wu, b):
    in_f = x.shape[1] // 2
    xl, xu = x[:, :in_f], x[:, in_f:]
    wl_pos, wl_neg = jnp.maximum(wl, 0.0), jnp.minimum(wl, 0.0)
    wu_pos, wu_neg = jnp.maximum(wu, 0.0), jnp.minimum(wu, 0.0)
    hi = lax.Precision.HIGHEST
    lower = (jnp.matmul(xl, wl_pos.T, precision=hi)
             + jnp.matmul(xu, wu_neg.T, precision=hi) + b)
    upper = (jnp.matmul(xu, wu_pos.T, precision=hi)
             + jnp.matmul(xl, wl_neg.T, precision=hi) + b)
    return jnp.concatenate([lower, upper], axis=1)


def _make_inputs(key, batch, in_features, out_features):
    k_w, k_d, k_b, k_x, k_r = jax.random.split(key, 5)
    # kaiming_uniform(a=sqrt(5)) bound, as in reset_parameters().
    gain = (2.0 / (1.0 + 5.0)) ** 0.5
    w_bound = gain * (3.0 / in_features) ** 0.5
    wl = jax.random.uniform(k_w, (out_features, in_features), jnp.float32,
                            -w_bound, w_bound)
    # upper_weight starts as a deepcopy of lower_weight; perturb slightly so the
    # lower/upper paths are exercised with distinct weights (post-training state).
    wu = wl + 0.01 * jax.random.normal(k_d, wl.shape, jnp.float32)
    b_bound = 1.0 / (in_features ** 0.5)
    b = jax.random.uniform(k_b, (out_features,), jnp.float32, -b_bound, b_bound)
    base = jax.random.normal(k_x, (batch, in_features), jnp.float32)
    width = 0.1 * jnp.abs(jax.random.normal(k_r, (batch, in_features), jnp.float32))
    x = jnp.concatenate([base, base + width], axis=1)   # interval-consistent input
    return x, wl, wu, b


if __name__ == "__main__":
    key = jax.random.PRNGKey(0)
    k1, k2 = jax.random.split(key)

    # Case 1: toy module-scale shapes (hidden=32) -> full-dim blocks, single N
    # tile, lane-dense fused (B, 2*out) output, grid (1,1,1).
    x1, wl1, wu1, b1 = _make_inputs(k1, 8, 32, 32)
    out1 = jax.block_until_ready(linear_interval_lu(x1, wl1, wu1, b1))
    ref1 = _reference(x1, wl1, wu1, b1)
    assert out1.shape == (8, 64)
    assert jnp.allclose(out1, ref1, atol=1e-4, rtol=1e-4), "case 1 mismatch"

    # Case 2: shapes exercising the tiled (M, N, K) grid, the dual accumulator,
    # the dual-BlockSpec x indexing and the (2, B, out) split output layout.
    # grid = (2, 2, 4).
    x2, wl2, wu2, b2 = _make_inputs(k2, 32, 512, 256)
    out2 = jax.block_until_ready(
        linear_interval_lu(x2, wl2, wu2, b2, tm=16, tn=128, tk=128))
    ref2 = _reference(x2, wl2, wu2, b2)
    assert out2.shape == (32, 512)
    assert jnp.allclose(out2, ref2, atol=1e-4, rtol=1e-4), "case 2 mismatch"

    print("KERNEL_OK")
</pallas_src>

<mosaic_0001>
module attributes {stable_mosaic.version = 11 : i64} {
  func.func @_interval_lu_kernel(%arg0: i32, %arg1: i32, %arg2: i32, %arg3: memref<8x32xf32, #tpu.memory_space<vmem>>, %arg4: memref<8x32xf32, #tpu.memory_space<vmem>>, %arg5: memref<32x32xf32, #tpu.memory_space<vmem>>, %arg6: memref<32x32xf32, #tpu.memory_space<vmem>>, %arg7: memref<1x32xf32, #tpu.memory_space<vmem>>, %arg8: memref<8x64xf32, #tpu.memory_space<vmem>>, %arg9: memref<8x32xf32, #tpu.memory_space<vmem>>, %arg10: memref<8x32xf32, #tpu.memory_space<vmem>>) attributes {dimension_semantics = [#tpu.dimension_semantics<parallel>, #tpu.dimension_semantics<parallel>, #tpu.dimension_semantics<arbitrary>], iteration_bounds = array<i64: 1, 1, 1>, scalar_prefetch = 0 : i64, scratch_operands = 2 : i64, tpu.core_type = #tpu.core_type<tc>, window_params = [{transform_indices = @transform_0, window_bounds = array<i64: 8, 32>}, {transform_indices = @transform_1, window_bounds = array<i64: 8, 32>}, {transform_indices = @transform_2, window_bounds = array<i64: 32, 32>}, {transform_indices = @transform_3, window_bounds = array<i64: 32, 32>}, {transform_indices = @transform_4, window_bounds = array<i64: 1, 32>}, {transform_indices = @transform_5, window_bounds = array<i64: 8, 64>}]} {
    %c0_i32 = arith.constant 0 : i32
    %0 = arith.cmpi eq, %arg2, %c0_i32 : i32
    %1 = arith.extui %0 : i1 to i32
    %c0_i32_0 = arith.constant 0 : i32
    %2 = arith.cmpi ne, %1, %c0_i32_0 : i32
    scf.if %2 {
      %cst_31 = arith.constant 0.000000e+00 : f32
      %32 = vector.broadcast %cst_31 : f32 to vector<8x32xf32>
      %c0_32 = arith.constant 0 : index
      %c0_33 = arith.constant 0 : index
      %33 = vector.load %arg9[%c0_32, %c0_33] : memref<8x32xf32, #tpu.memory_space<vmem>>, vector<8x32xf32>
      tpu.vector_store %arg9[%c0_32, %c0_33], %32 {strides = array<i32>} : memref<8x32xf32, #tpu.memory_space<vmem>>, vector<8x32xf32>,
      %cst_34 = arith.constant 0.000000e+00 : f32
      %34 = vector.broadcast %cst_34 : f32 to vector<8x32xf32>
      %c0_35 = arith.constant 0 : index
      %c0_36 = arith.constant 0 : index
      %35 = vector.load %arg10[%c0_35, %c0_36] : memref<8x32xf32, #tpu.memory_space<vmem>>, vector<8x32xf32>
      tpu.vector_store %arg10[%c0_35, %c0_36], %34 {strides = array<i32>} : memref<8x32xf32, #tpu.memory_space<vmem>>, vector<8x32xf32>,
    } else {
    }
    %c0 = arith.constant 0 : index
    %c0_1 = arith.constant 0 : index
    %3 = vector.load %arg3[%c0, %c0_1] : memref<8x32xf32, #tpu.memory_space<vmem>>, vector<8x32xf32>
    %c0_2 = arith.constant 0 : index
    %c0_3 = arith.constant 0 : index
    %4 = vector.load %arg4[%c0_2, %c0_3] : memref<8x32xf32, #tpu.memory_space<vmem>>, vector<8x32xf32>
    %c0_4 = arith.constant 0 : index
    %c0_5 = arith.constant 0 : index
    %5 = vector.load %arg5[%c0_4, %c0_5] : memref<32x32xf32, #tpu.memory_space<vmem>>, vector<32x32xf32>
    %c0_6 = arith.constant 0 : index
    %c0_7 = arith.constant 0 : index
    %6 = vector.load %arg6[%c0_6, %c0_7] : memref<32x32xf32, #tpu.memory_space<vmem>>, vector<32x32xf32>
    %cst = arith.constant 0.000000e+00 : f32
    %7 = vector.broadcast %cst : f32 to vector<32x32xf32>
    %8 = arith.maximumf %5, %7 : vector<32x32xf32>
    %9 = arith.subf %5, %8 : vector<32x32xf32>
    %cst_8 = arith.constant 0.000000e+00 : f32
    %10 = vector.broadcast %cst_8 : f32 to vector<32x32xf32>
    %11 = arith.maximumf %6, %10 : vector<32x32xf32>
    %12 = arith.subf %6, %11 : vector<32x32xf32>
    %c0_9 = arith.constant 0 : index
    %c0_10 = arith.constant 0 : index
    %13 = vector.load %arg9[%c0_9, %c0_10] : memref<8x32xf32, #tpu.memory_space<vmem>>, vector<8x32xf32>
    %cst_11 = arith.constant dense<0.000000e+00> : vector<8x32xf32>
    %14 = tpu.matmul %3, %8, %cst_11 {dimension_numbers = #tpu.dot_dimension_numbers<[1], [1], [0], [0], [0, 0, 1, 0], [], []>} : vector<8x32xf32>, vector<32x32xf32>, vector<8x32xf32> -> vector<8x32xf32>
    %15 = arith.addf %13, %14 : vector<8x32xf32>
    %c0_12 = arith.constant 0 : index
    %c0_13 = arith.constant 0 : index
    %16 = vector.load %arg9[%c0_12, %c0_13] : memref<8x32xf32, #tpu.memory_space<vmem>>, vector<8x32xf32>
    tpu.vector_store %arg9[%c0_12, %c0_13], %15 {strides = array<i32>} : memref<8x32xf32, #tpu.memory_space<vmem>>, vector<8x32xf32>,
    %c0_14 = arith.constant 0 : index
    %c0_15 = arith.constant 0 : index
    %17 = vector.load %arg9[%c0_14, %c0_15] : memref<8x32xf32, #tpu.memory_space<vmem>>, vector<8x32xf32>
    %cst_16 = arith.constant dense<0.000000e+00> : vector<8x32xf32>
    %18 = tpu.matmul %4, %12, %cst_16 {dimension_numbers = #tpu.dot_dimension_numbers<[1], [1], [0], [0], [0, 0, 1, 0], [], []>} : vector<8x32xf32>, vector<32x32xf32>, vector<8x32xf32> -> vector<8x32xf32>
    %19 = arith.addf %17, %18 : vector<8x32xf32>
    %c0_17 = arith.constant 0 : index
    %c0_18 = arith.constant 0 : index
    %20 = vector.load %arg9[%c0_17, %c0_18] : memref<8x32xf32, #tpu.memory_space<vmem>>, vector<8x32xf32>
    tpu.vector_store %arg9[%c0_17, %c0_18], %19 {strides = array<i32>} : memref<8x32xf32, #tpu.memory_space<vmem>>, vector<8x32xf32>,
    %c0_19 = arith.constant 0 : index
    %c0_20 = arith.constant 0 : index
    %21 = vector.load %arg10[%c0_19, %c0_20] : memref<8x32xf32, #tpu.memory_space<vmem>>, vector<8x32xf32>
    %cst_21 = arith.constant dense<0.000000e+00> : vector<8x32xf32>
    %22 = tpu.matmul %4, %11, %cst_21 {dimension_numbers = #tpu.dot_dimension_numbers<[1], [1], [0], [0], [0, 0, 1, 0], [], []>} : vector<8x32xf32>, vector<32x32xf32>, vector<8x32xf32> -> vector<8x32xf32>
    %23 = arith.addf %21, %22 : vector<8x32xf32>
    %c0_22 = arith.constant 0 : index
    %c0_23 = arith.constant 0 : index
    %24 = vector.load %arg10[%c0_22, %c0_23] : memref<8x32xf32, #tpu.memory_space<vmem>>, vector<8x32xf32>
    tpu.vector_store %arg10[%c0_22, %c0_23], %23 {strides = array<i32>} : memref<8x32xf32, #tpu.memory_space<vmem>>, vector<8x32xf32>,
    %c0_24 = arith.constant 0 : index
    %c0_25 = arith.constant 0 : index
    %25 = vector.load %arg10[%c0_24, %c0_25] : memref<8x32xf32, #tpu.memory_space<vmem>>, vector<8x32xf32>
    %cst_26 = arith.constant dense<0.000000e+00> : vector<8x32xf32>
    %26 = tpu.matmul %3, %9, %cst_26 {dimension_numbers = #tpu.dot_dimension_numbers<[1], [1], [0], [0], [0, 0, 1, 0], [], []>} : vector<8x32xf32>, vector<32x32xf32>, vector<8x32xf32> -> vector<8x32xf32>
    %27 = arith.addf %25, %26 : vector<8x32xf32>
    %c0_27 = arith.constant 0 : index
    %c0_28 = arith.constant 0 : index
    %28 = vector.load %arg10[%c0_27, %c0_28] : memref<8x32xf32, #tpu.memory_space<vmem>>, vector<8x32xf32>
    tpu.vector_store %arg10[%c0_27, %c0_28], %27 {strides = array<i32>} : memref<8x32xf32, #tpu.memory_space<vmem>>, vector<8x32xf32>,
    %c0_i32_29 = arith.constant 0 : i32
    %29 = arith.cmpi eq, %arg2, %c0_i32_29 : i32
    %30 = arith.extui %29 : i1 to i32
    %c0_i32_30 = arith.constant 0 : i32
    %31 = arith.cmpi ne, %30, %c0_i32_30 : i32
    scf.if %31 {
      %c0_31 = arith.constant 0 : index
      %c0_32 = arith.constant 0 : index
      %32 = vector.load %arg7[%c0_31, %c0_32] : memref<1x32xf32, #tpu.memory_space<vmem>>, vector<1x32xf32>
      %c0_33 = arith.constant 0 : index
      %c0_34 = arith.constant 0 : index
      %33 = vector.load %arg9[%c0_33, %c0_34] : memref<8x32xf32, #tpu.memory_space<vmem>>, vector<8x32xf32>
      %34 = vector.broadcast %32 : vector<1x32xf32> to vector<8x32xf32>
      %35 = arith.addf %33, %34 : vector<8x32xf32>
      %c0_35 = arith.constant 0 : index
      %c0_36 = arith.constant 0 : index
      %36 = vector.load %arg10[%c0_35, %c0_36] : memref<8x32xf32, #tpu.memory_space<vmem>>, vector<8x32xf32>
      %37 = vector.broadcast %32 : vector<1x32xf32> to vector<8x32xf32>
      %38 = arith.addf %36, %37 : vector<8x32xf32>
      %c0_37 = arith.constant 0 : index
      %c0_38 = arith.constant 0 : index
      %39 = vector.load %arg8[%c0_37, %c0_38] : memref<8x64xf32, #tpu.memory_space<vmem>>, vector<8x32xf32>
      tpu.vector_store %arg8[%c0_37, %c0_38], %35 {strides = array<i32>} : memref<8x64xf32, #tpu.memory_space<vmem>>, vector<8x32xf32>,
      %c0_39 = arith.constant 0 : index
      %c32 = arith.constant 32 : index
      %40 = vector.load %arg8[%c0_39, %c32] : memref<8x64xf32, #tpu.memory_space<vmem>>, vector<8x32xf32>
      tpu.vector_store %arg8[%c0_39, %c32], %38 {strides = array<i32>} : memref<8x64xf32, #tpu.memory_space<vmem>>, vector<8x32xf32>,
    } else {
    }
    return
  }
  func.func @transform_0(%arg0: i32, %arg1: i32, %arg2: i32) -> (i32, i32) {
    %c0_i32 = arith.constant 0 : i32
    return %arg0, %arg2 : i32, i32
  }
  func.func @transform_1(%arg0: i32, %arg1: i32, %arg2: i32) -> (i32, i32) {
    %c0_i32 = arith.constant 0 : i32
    return %arg0, %arg2 : i32, i32
  }
  func.func @transform_2(%arg0: i32, %arg1: i32, %arg2: i32) -> (i32, i32) {
    %c0_i32 = arith.constant 0 : i32
    return %arg1, %arg2 : i32, i32
  }
  func.func @transform_3(%arg0: i32, %arg1: i32, %arg2: i32) -> (i32, i32) {
    %c0_i32 = arith.constant 0 : i32
    return %arg1, %arg2 : i32, i32
  }
  func.func @transform_4(%arg0: i32, %arg1: i32, %arg2: i32) -> (i32, i32) {
    %c0_i32 = arith.constant 0 : i32
    %c0_i32_0 = arith.constant 0 : i32
    return %c0_i32, %arg1 : i32, i32
  }
  func.func @transform_5(%arg0: i32, %arg1: i32, %arg2: i32) -> (i32, i32) {
    %c0_i32 = arith.constant 0 : i32
    %c0_i32_0 = arith.constant 0 : i32
    return %arg0, %c0_i32 : i32, i32
  }
}

</mosaic_0001>

<bundles_post_ra>
// kernel: tpu_custom_call.1
= control target key start
LH: loop header
LB: loop body
LE: loop exit
PB: predicated region body
PF: predicated region fallthrough
CT: control target
= control target key end

     0   :  { %10 = vsyncpa [#allocation5], 0  ;;  %s539_s0 = inlined_call_operand.hbm [shape: f32[8,32], index: 0, kind: input, shape index: {}]   ;;  %s540_s1 = inlined_call_operand.hbm [shape: f32[8,32], index: 1, kind: input, shape index: {}]   ;;  %s541_s2 = inlined_call_operand.hbm [shape: f32[32,32], index: 2, kind: input, shape index: {}]   ;;  %s542_s3 = inlined_call_operand.hbm [shape: f32[32,32], index: 3, kind: input, shape index: {}]   ;;  %s543_s4 = inlined_call_operand.vmem [shape: f32[1,32], index: 4, kind: input, shape index: {}]   ;;  %s544_s5 = inlined_call_operand.hbm [shape: f32[8,64], index: 5, kind: output, shape index: {}]  }
   0x1   :  { %11 = vsyncpa [#allocation8], 0 }
   0x2   :  { %12 = vsyncpa [#allocation11], 0  ;;  %s30_s20 = sshll.u32 %s540_s1, 4  ;;  %s31_s20 = int_to_ptr.hbm [resolvable:$true] %s30_s20 }
   0x3   :  { %13 = vsyncpa [#allocation6], 0  ;;  %s455_s21 = smov [#allocation7]   ;;  %s19_s25 = sshll.u32 %s539_s0, 4  ;;  %s20_s25 = int_to_ptr.hbm [resolvable:$true] %s19_s25 }
   0x4   :  { %s32_s22 = sshll.u32 %s455_s21, 4  ;;  %s456_s26 = smov [#allocation4]   ;;  %s33_s22 = int_to_ptr.vmem [resolvable:$true] %s32_s22 }
   0x5   :  { %35 = dma.hbm_to_vmem [thread:$0]  %s31_s20, 128, %s33_s22, [#allocation8]  }
   0x6   :  { %s21_s27 = sshll.u32 %s456_s26, 4  ;;  %s40_s30 = sshll.u32 %s541_s2, 4  ;;  %s22_s27 = int_to_ptr.vmem [resolvable:$true] %s21_s27  ;;  %s41_s30 = int_to_ptr.hbm [resolvable:$true] %s40_s30 }
   0x7   :  { %24 = dma.hbm_to_vmem [thread:$0]  %s20_s25, 128, %s22_s27, [#allocation5]  }
   0x8   :  { %s457_s1 = smov [#allocation9]   ;;  %s53_s9 = sshll.u32 %s542_s3, 4  ;;  %s54_s9 = int_to_ptr.hbm [resolvable:$true] %s53_s9 }
   0x9   :  { %s42_s6 = sshll.u32 %s457_s1, 4  ;;  %s458_s10 = smov 128   ;;  %s43_s6 = int_to_ptr.vmem [resolvable:$true] %s42_s6 }
   0xa   :  { %s459_s0 = smov 8   ;;  %s460_s11 = smov [#allocation10]  }
   0xb   :  { %48 = dma.hbm_to_vmem [thread:$0]  %s41_s30, 512, %s43_s6, [#allocation8], %s458_s10, %s458_s10, %s459_s0  }
   0xc   :  { %s55_s12 = sshll.u32 %s460_s11, 4  ;;  %s56_s12 = int_to_ptr.vmem [resolvable:$true] %s55_s12 }
   0xd   :  { %61 = dma.hbm_to_vmem [thread:$0]  %s54_s9, 512, %s56_s12, [#allocation11], %s458_s10, %s458_s10, %s459_s0  }
   0xe   :  { %447 = dma.done.wait [#allocation5], 128  }
   0xf   :  { %448 = vsyncadd [#allocation5], 4294967168 }
  0x10   :  { %449 = dma.done.wait [#allocation8], 640  }
  0x11   :  { %450 = vsyncadd [#allocation8], 4294966656 }
  0x12   :  { %451 = dma.done.wait [#allocation11], 512  }
  0x13   :  { %452 = vsyncadd [#allocation11], 4294966784  ;;  %vm84_vm0 = vcmask 261120   ;;  %v461_v0 = vmov 0.0   ;;  %v96_v1 = vld [vmem:[#allocation10 + $0x18] sm:$0xff]  ;;  %v95_v2 = vld [vmem:[#allocation10 + $0x10] sm:$0xff] }
  0x14   :  { %86 = vst.msk [vmem:[#allocation3] sm:$0xff] %vm84_vm0, %v461_v0  ;;  %v108_v3 = vmax.f32 %v96_v1, 0.0  ;;  %v92_v4 = vld [vmem:[#allocation9 + $0x18] sm:$0xff]  ;;  %v91_v5 = vld [vmem:[#allocation9 + $0x10] sm:$0xff]  ;;  %v107_v8 = vmax.f32 %v95_v2, 0.0  ;;  %v90_v9 = vld [vmem:[#allocation9 + $0x8] sm:$0xff] }
  0x15   :  { %85 = vst.msk [vmem:[#allocation2] sm:$0xff] %vm84_vm0, %v461_v0  ;;  %v100_v6 = vmax.f32 %v92_v4, 0.0  ;;  %v99_v7 = vmax.f32 %v91_v5, 0.0  ;;  %v94_v11 = vld [vmem:[#allocation10 + $0x8] sm:$0xff]  ;;  %v98_v15 = vmax.f32 %v90_v9, 0.0  ;;  %v89_v17 = vld [vmem:[#allocation9] sm:$0xff] }
  0x16   :  { %307 = vmatpush.xpose.msk.msra.mxu2 %vm84_vm0, %v108_v3  ;;  %v112_v10 = vsub.f32 %v96_v1, %v108_v3  ;;  %v111_v13 = vsub.f32 %v95_v2, %v107_v8  ;;  %v106_v16 = vmax.f32 %v94_v11, 0.0  ;;  %v93_v18 = vld [vmem:[#allocation10] sm:$0xff]  ;;  %v97_v21 = vmax.f32 %v89_v17, 0.0  ;;  %v88_v25 = vld [vmem:[#allocation7] sm:$0xff]  ;;  %v87_v26 = vld [vmem:[#allocation4] sm:$0xff]  ;;  %s462_s13 = smov 32  }
  0x17   :  { %v104_v12 = vsub.f32 %v92_v4, %v100_v6  ;;  %297 = vmatpush.xpose.msk.msra.mxu0 %vm84_vm0, %v100_v6  ;;  %v103_v14 = vsub.f32 %v91_v5, %v99_v7  ;;  %v102_v20 = vsub.f32 %v90_v9, %v98_v15  ;;  %v105_v22 = vmax.f32 %v93_v18, 0.0  ;;  %v326_v39 = vld [vmem:[%s543_s4] ss:$0 sm:$0xff]  ;;  %s463_s14 = smov [#allocation12]   ;;  %s285_s18 = sshll.u32 %s544_s5, 4  ;;  %s286_s18 = int_to_ptr.hbm [resolvable:$true] %s285_s18 }
  0x18   :  { %302 = vmatpush.xpose.msk.msra.mxu1 %vm84_vm0, %v112_v10  ;;  %v110_v19 = vsub.f32 %v94_v11, %v106_v16  ;;  %v101_v24 = vsub.f32 %v89_v17, %v97_v21  ;;  %s283_s15 = sshll.u32 %s463_s14, 4  ;;  %vm276_vm1 = vcmask 523520   ;;  %s284_s15 = int_to_ptr.vmem [resolvable:$true] %s283_s15 }
  0x19   :  { %312 = vmatpush.xpose.msk.msra.mxu3 %vm84_vm0, %v104_v12  ;;  %v109_v23 = vsub.f32 %v93_v18, %v105_v22 }
  0x1a   :  { %308 = vmatpush.xpose.msk.msra.mxu2 %vm84_vm0, %v107_v8 }
  0x1b   :  { %298 = vmatpush.xpose.msk.msra.mxu0 %vm84_vm0, %v99_v7  ;;  %v190_v30 = vld [vmem:[#allocation3] sm:$0xff] }
  0x1c   :  { %303 = vmatpush.xpose.msk.msra.mxu1 %vm84_vm0, %v111_v13  ;;  %v113_v27 = vld [vmem:[#allocation2] sm:$0xff] }
  0x1d   :  { %313 = vmatpush.xpose.msk.msra.mxu3 %vm84_vm0, %v103_v14 }
  0x1e   :  { %309 = vmatpush.xpose.msk.msra.mxu2 %vm84_vm0, %v106_v16 }
  0x1f   :  { %299 = vmatpush.xpose.msk.msra.mxu0 %vm84_vm0, %v98_v15 }
  0x20   :  { %304 = vmatpush.xpose.msk.msra.mxu1 %vm84_vm0, %v110_v19 }
  0x21   :  { %314 = vmatpush.xpose.msk.msra.mxu3 %vm84_vm0, %v102_v20 }
  0x22   :  { %310 = vmatpush.xpose.msk.msra.mxu2 %vm84_vm0, %v105_v22 }
  0x23   :  { %300 = vmatpush.xpose.msk.msra.mxu0 %vm84_vm0, %v97_v21 }
  0x24   :  { %305 = vmatpush.xpose.msk.msra.mxu1 %vm84_vm0, %v109_v23 }
  0x25   :  { %311 = vmatmul.msk.f32.vlgmr.msra.gmra.mxu2 %vm84_vm0, %v88_v25  ;;  %315 = vmatpush.xpose.msk.msra.mxu3 %vm84_vm0, %v101_v24 }
  0x26   :  { %301 = vmatmul.msk.f32.vlgmr.msra.gmra.mxu0 %vm84_vm0, %v87_v26 }
  0x27   :  { %306 = vmatmul.msk.f32.vlgmr.msra.gmra.mxu1 %vm84_vm0, %v88_v25 }
  0x28   :  { %316 = vmatmul.msk.f32.vlgmr.msra.gmra.mxu3 %vm84_vm0, %v87_v26 }
  0xa3   :  { %v147_v28 = vpop.f32.mrf.mxu0 }
  0xa4   :  { %v150_v29 = vadd.f32 %v147_v28, %v113_v27  ;;  %v185_v33 = vpop.f32.mrf.mxu1 }
  0xa6   :  { %151 = vst.msk [vmem:[#allocation2] sm:$0xff] %vm84_vm0, %v150_v29 }
  0xa8   :  { %v220_v31 = vpop.f32.mrf.mxu2 }
  0xa9   :  { %v223_v32 = vadd.f32 %v220_v31, %v190_v30 }
  0xab   :  { %224 = vst.msk [vmem:[#allocation3] sm:$0xff] %vm84_vm0, %v223_v32  ;;  %v255_v36 = vpop.f32.mrf.mxu3 }
  0xad   :  { %v152_v34 = vld [vmem:[#allocation2] sm:$0xff] }
  0xae   :  { %v188_v35 = vadd.f32 %v185_v33, %v152_v34 }
  0xb0   :  { %189 = vst.msk [vmem:[#allocation2] sm:$0xff] %vm84_vm0, %v188_v35 }
  0xb2   :  { %v225_v37 = vld [vmem:[#allocation3] sm:$0xff] }
  0xb3   :  { %v258_v38 = vadd.f32 %v255_v36, %v225_v37 }
  0xb5   :  { %259 = vst.msk [vmem:[#allocation3] sm:$0xff] %vm84_vm0, %v258_v38 }
  0xb7   :  { %v264_v42 = vld [vmem:[#allocation2] sm:$0xff] }
  0xb8   :  { %v268_v43 = vadd.f32 %v326_v39, %v264_v42 }
  0xba   :  { %271 = vst.msk [vmem:[#allocation12] sm:$0xff] %vm84_vm0, %v268_v43 }
  0xbc   :  { %v269_v40 = vld [vmem:[#allocation3] sm:$0xff] }
  0xbd   :  { %v270_v41 = vadd.f32 %v326_v39, %v269_v40 }
  0xbf   :  { %273 = vrot.lane.b32.xlu0 %v270_v41, %s462_s13 }
 0x131   :  { %v274_v44 = vpop.permute.xlu0 %273 }
 0x132   :  { %277 = vst.msk [vmem:[#allocation12] sm:$0xff] %vm276_vm1, %v274_v44 }
 0x133   :  { %288 = dma.vmem_to_hbm [thread:$0]  %s284_s15, 128, %s286_s18, [#allocation6]  }
 0x134   :  { %453 = dma.done.wait [#allocation6], 128  }
 0x135   :  { %454 = vsyncadd [#allocation6], 4294967168 }
 0x136   :  { %293 = vsyncpa [#allocation5], 1 }
 0x137   :  { %294 = vsyncpa [#allocation8], 1 }
 0x138   :  { %295 = vsyncpa [#allocation11], 1 }
 0x139   :  { %296 = vsyncpa [#allocation6], 1 }

</bundles_post_ra>
